<compile_context>
chip_gen: v6e
topology: v6e:2x2x1
jax: 0.10.0
libtpu: 0.0.40
codegen_flags: <defaults>
</compile_context>

<pallas_src>
import math

import jax
import jax.numpy as jnp
from jax.experimental import pallas as pl
from jax.experimental.pallas import tpu as pltpu


# Row (M) and output-feature (N) tile targets.  Multiples of 8 / 128, so tiled
# blocks satisfy the (8, 128) layout rule, and small enough that the
# double-buffered x / w / out tiles stay well within v7x's 64 MiB VMEM (and
# v5e's scoped default) for typical HAWK widths (d ~ 1-2.5K).
_TM_TARGET = 512
_TN_TARGET = 512


def _einsum_kernel(x_ref, w_ref, b_ref, o_ref):
    # x_ref: (tm, d)     current row tile of the flattened input
    # w_ref: (C, d, tn)  N-slab of the stacked weights (all C projections)
    # b_ref: (C, 1, tn)  matching bias slab
    # o_ref: (C, tm, tn)
    x = x_ref[...]
    C = w_ref.shape[0]
    for c in range(C):  # C is tiny & static (2) -> unrolled, static indexing
        acc = jnp.dot(x, w_ref[c], preferred_element_type=jnp.float32)  # MXU
        o_ref[c] = (acc + b_ref[c].astype(jnp.float32)).astype(o_ref.dtype)


@jax.jit
def einsum_forward(x, w, b):
    """out = einsum('...td,cdD->c...tD', x, w) + b (b broadcast over leading dims)."""
    *lead, d = x.shape
    C, d2, D = w.shape
    assert d == d2
    BT = math.prod(lead) if lead else 1

    x2 = x.reshape(BT, d)
    b2 = b.reshape(C, 1, D)

    # --- tile selection: full extent for small problems, fixed tile otherwise.
    tm = BT if BT <= _TM_TARGET else _TM_TARGET
    tn = D if D <= _TN_TARGET else _TN_TARGET
    ni = pl.cdiv(BT, tm)
    nj = pl.cdiv(D, tn)
    BT_pad, D_pad = ni * tm, nj * tn

    # Zero-pad so every tile is full; padded rows/cols are sliced away below.
    if BT_pad != BT:
        x2 = jnp.pad(x2, ((0, BT_pad - BT), (0, 0)))
    if D_pad != D:
        w = jnp.pad(w, ((0, 0), (0, 0), (0, D_pad - D)))
        b2 = jnp.pad(b2, ((0, 0), (0, 0), (0, D_pad - D)))

    flops = 2 * C * BT * d * D
    bytes_accessed = (
        x2.size * x2.dtype.itemsize
        + w.size * w.dtype.itemsize
        + b2.size * b2.dtype.itemsize
        + C * BT_pad * D_pad * x.dtype.itemsize
    )

    out = pl.pallas_call(
        _einsum_kernel,
        out_shape=jax.ShapeDtypeStruct((C, BT_pad, D_pad), x.dtype),
        grid_spec=pltpu.PrefetchScalarGridSpec(
            num_scalar_prefetch=0,
            # N-tile axis outer, row-tile axis inner (fastest): the weight /
            # bias slab of the current N tile keeps the same block index across
            # the whole inner row sweep (no re-DMA), so only x / out stream.
            grid=(nj, ni),
            in_specs=[
                pl.BlockSpec((tm, d), lambda j, i: (i, 0)),        # x row tile
                pl.BlockSpec((C, d, tn), lambda j, i: (0, 0, j)),  # w slab (all C)
                pl.BlockSpec((C, 1, tn), lambda j, i: (0, 0, j)),  # bias slab
            ],
            out_specs=pl.BlockSpec((C, tm, tn), lambda j, i: (0, i, j)),
        ),
        compiler_params=pltpu.CompilerParams(
            # Every output tile is independent -> both axes parallel
            # (lets the grid shard across megacore / v7x's two TensorCores).
            dimension_semantics=("parallel", "parallel"),
            # Above the default scoped limits (16 MiB v5e / 32 MiB v6e,v7x),
            # safely below v7x's 64 MiB physical VMEM.
            vmem_limit_bytes=48 * 1024 * 1024,
        ),
        cost_estimate=pl.CostEstimate(
            flops=flops, transcendentals=0, bytes_accessed=bytes_accessed),
    )(x2, w, b2)

    out = out[:, :BT, :D]
    return out.reshape((C, *lead, D))


def init_params(key, C, d, D, w_init_variance_scale=1.0, dtype=jnp.float32):
    # Matches Einsum.reset_parameters: normal(0, sqrt(scale / in_dim)), zero bias.
    std = math.sqrt(w_init_variance_scale / d)
    w = jax.random.normal(key, (C, d, D), dtype=dtype) * std
    b = jnp.zeros((C, 1, 1, D), dtype=dtype)
    return w, b


if __name__ == "__main__":
    key = jax.random.PRNGKey(0)
    kx, kw, kb, kx2, kw2 = jax.random.split(key, 5)

    # --- Test 1: small shapes (single full-extent tile, no padding). ---
    B, T, d, D, C = 2, 8, 32, 64, 2
    x = jax.random.normal(kx, (B, T, d), dtype=jnp.float32)
    w, b = init_params(kw, C, d, D)
    b = 0.1 * jax.random.normal(kb, (C, 1, 1, D), dtype=jnp.float32)  # non-trivial bias
    out = jax.block_until_ready(einsum_forward(x, w, b))
    ref = jnp.einsum("btd,cdD->cbtD", x, w) + b
    assert out.shape == (C, B, T, D)
    assert jnp.allclose(out, ref, atol=1e-4, rtol=1e-4)

    # --- Test 2: shapes exercising the tiled + padded path (2x2 grid). ---
    B2, T2, d2, D2 = 2, 300, 128, 640   # BT=600 -> 2 row tiles; D=640 -> 2 N tiles
    x_big = jax.random.normal(kx2, (B2, T2, d2), dtype=jnp.float32)
    w_big, b_big = init_params(kw2, C, d2, D2)
    out_big = jax.block_until_ready(einsum_forward(x_big, w_big, b_big))
    ref_big = jnp.einsum("btd,cdD->cbtD", x_big, w_big) + b_big
    assert out_big.shape == (C, B2, T2, D2)
    assert jnp.allclose(out_big, ref_big, atol=1e-4, rtol=1e-4)

    print("KERNEL_OK")
</pallas_src>

<mosaic_0001>
module attributes {stable_mosaic.version = 11 : i64} {
  func.func @_einsum_kernel(%arg0: i32, %arg1: i32, %arg2: memref<16x32xf32, #tpu.memory_space<vmem>>, %arg3: memref<2x32x64xf32, #tpu.memory_space<vmem>>, %arg4: memref<2x1x64xf32, #tpu.memory_space<vmem>>, %arg5: memref<2x16x64xf32, #tpu.memory_space<vmem>>) attributes {dimension_semantics = [#tpu.dimension_semantics<parallel>, #tpu.dimension_semantics<parallel>], iteration_bounds = array<i64: 1, 1>, scalar_prefetch = 0 : i64, scratch_operands = 0 : i64, tpu.core_type = #tpu.core_type<tc>, window_params = [{transform_indices = @transform_0, window_bounds = array<i64: 16, 32>}, {transform_indices = @transform_1, window_bounds = array<i64: 2, 32, 64>}, {transform_indices = @transform_2, window_bounds = array<i64: 2, 1, 64>}, {transform_indices = @transform_3, window_bounds = array<i64: 2, 16, 64>}]} {
    %c0 = arith.constant 0 : index
    %c0_0 = arith.constant 0 : index
    %0 = vector.load %arg2[%c0, %c0_0] : memref<16x32xf32, #tpu.memory_space<vmem>>, vector<16x32xf32>
    %c0_1 = arith.constant 0 : index
    %c0_2 = arith.constant 0 : index
    %c0_3 = arith.constant 0 : index
    %1 = vector.load %arg3[%c0_1, %c0_2, %c0_3] : memref<2x32x64xf32, #tpu.memory_space<vmem>>, vector<1x32x64xf32>
    %2 = vector.shape_cast %1 : vector<1x32x64xf32> to vector<32x64xf32>
    %cst = arith.constant dense<0.000000e+00> : vector<16x64xf32>
    %3 = tpu.matmul %0, %2, %cst {dimension_numbers = #tpu.dot_dimension_numbers<[1], [0], [0], [1], [0, 0, 1, 1], [], []>} : vector<16x32xf32>, vector<32x64xf32>, vector<16x64xf32> -> vector<16x64xf32>
    %c0_4 = arith.constant 0 : index
    %c0_5 = arith.constant 0 : index
    %c0_6 = arith.constant 0 : index
    %4 = vector.load %arg4[%c0_4, %c0_5, %c0_6] : memref<2x1x64xf32, #tpu.memory_space<vmem>>, vector<1x1x64xf32>
    %5 = vector.shape_cast %4 : vector<1x1x64xf32> to vector<1x64xf32>
    %6 = vector.broadcast %5 : vector<1x64xf32> to vector<16x64xf32>
    %7 = arith.addf %3, %6 : vector<16x64xf32>
    %c0_7 = arith.constant 0 : index
    %c0_8 = arith.constant 0 : index
    %c0_9 = arith.constant 0 : index
    %8 = vector.load %arg5[%c0_7, %c0_8, %c0_9] : memref<2x16x64xf32, #tpu.memory_space<vmem>>, vector<1x16x64xf32>
    %9 = vector.shape_cast %8 : vector<1x16x64xf32> to vector<16x64xf32>
    %10 = vector.shape_cast %7 : vector<16x64xf32> to vector<1x16x64xf32>
    tpu.vector_store %arg5[%c0_7, %c0_8, %c0_9], %10 {strides = array<i32>} : memref<2x16x64xf32, #tpu.memory_space<vmem>>, vector<1x16x64xf32>,
    %c1 = arith.constant 1 : index
    %c0_10 = arith.constant 0 : index
    %c0_11 = arith.constant 0 : index
    %11 = vector.load %arg3[%c1, %c0_10, %c0_11] : memref<2x32x64xf32, #tpu.memory_space<vmem>>, vector<1x32x64xf32>
    %12 = vector.shape_cast %11 : vector<1x32x64xf32> to vector<32x64xf32>
    %cst_12 = arith.constant dense<0.000000e+00> : vector<16x64xf32>
    %13 = tpu.matmul %0, %12, %cst_12 {dimension_numbers = #tpu.dot_dimension_numbers<[1], [0], [0], [1], [0, 0, 1, 1], [], []>} : vector<16x32xf32>, vector<32x64xf32>, vector<16x64xf32> -> vector<16x64xf32>
    %c1_13 = arith.constant 1 : index
    %c0_14 = arith.constant 0 : index
    %c0_15 = arith.constant 0 : index
    %14 = vector.load %arg4[%c1_13, %c0_14, %c0_15] : memref<2x1x64xf32, #tpu.memory_space<vmem>>, vector<1x1x64xf32>
    %15 = vector.shape_cast %14 : vector<1x1x64xf32> to vector<1x64xf32>
    %16 = vector.broadcast %15 : vector<1x64xf32> to vector<16x64xf32>
    %17 = arith.addf %13, %16 : vector<16x64xf32>
    %c1_16 = arith.constant 1 : index
    %c0_17 = arith.constant 0 : index
    %c0_18 = arith.constant 0 : index
    %18 = vector.load %arg5[%c1_16, %c0_17, %c0_18] : memref<2x16x64xf32, #tpu.memory_space<vmem>>, vector<1x16x64xf32>
    %19 = vector.shape_cast %18 : vector<1x16x64xf32> to vector<16x64xf32>
    %20 = vector.shape_cast %17 : vector<16x64xf32> to vector<1x16x64xf32>
    tpu.vector_store %arg5[%c1_16, %c0_17, %c0_18], %20 {strides = array<i32>} : memref<2x16x64xf32, #tpu.memory_space<vmem>>, vector<1x16x64xf32>,
    return
  }
  func.func @transform_0(%arg0: i32, %arg1: i32) -> (i32, i32) {
    %c0_i32 = arith.constant 0 : i32
    %c0_i32_0 = arith.constant 0 : i32
    return %arg1, %c0_i32 : i32, i32
  }
  func.func @transform_1(%arg0: i32, %arg1: i32) -> (i32, i32, i32) {
    %c0_i32 = arith.constant 0 : i32
    %c0_i32_0 = arith.constant 0 : i32
    %c0_i32_1 = arith.constant 0 : i32
    return %c0_i32, %c0_i32_0, %arg0 : i32, i32, i32
  }
  func.func @transform_2(%arg0: i32, %arg1: i32) -> (i32, i32, i32) {
    %c0_i32 = arith.constant 0 : i32
    %c0_i32_0 = arith.constant 0 : i32
    %c0_i32_1 = arith.constant 0 : i32
    return %c0_i32, %c0_i32_0, %arg0 : i32, i32, i32
  }
  func.func @transform_3(%arg0: i32, %arg1: i32) -> (i32, i32, i32) {
    %c0_i32 = arith.constant 0 : i32
    %c0_i32_0 = arith.constant 0 : i32
    return %c0_i32, %arg1, %arg0 : i32, i32, i32
  }
}

</mosaic_0001>

<bundles_post_ra>
// kernel: einsum_forward.1
= control target key start
LH: loop header
LB: loop body
LE: loop exit
PB: predicated region body
PF: predicated region fallthrough
CT: control target
= control target key end

     0   :  { %8 = vsyncpa [#allocation3], 0  ;;  %s411_s0 = inlined_call_operand.hbm [shape: f32[16,32], index: 0, kind: input, shape index: {}]   ;;  %s412_s1 = inlined_call_operand.hbm [shape: f32[2,32,64], index: 1, kind: input, shape index: {}]   ;;  %s413_s2 = inlined_call_operand.vmem [shape: f32[2,1,64], index: 2, kind: input, shape index: {}]   ;;  %s414_s3 = inlined_call_operand.hbm [shape: f32[2,16,64], index: 3, kind: output, shape index: {}]  }
   0x1   :  { %9 = vsyncpa [#allocation6], 0 }
   0x2   :  { %10 = vsyncpa [#allocation4], 0  ;;  %s362_s12 = smov [#allocation2]  }
   0x3   :  { %s16_s13 = sshll.u32 %s362_s12, 4  ;;  %s17_s13 = int_to_ptr.vmem [resolvable:$true] %s16_s13 }
   0x4   :  { %s304_s14 = scalar_lea.vmem %s17_s13, 256  ;;  %p309_p1 = scmp.lt.s32.totalorder %s17_s13, %s17_s13 }
   0x5   :  { %p305_p0 = scmp.ne.s32.totalorder %s17_s13, %s304_s14  ;;  %p310_p2 = scmp.lt.s32.totalorder %s304_s14, %s304_s14 }
   0x7   :  { %p311_p3 = por %p310_p2, %p309_p1 }
   0x9   :  { %p312_p4 = pnand %p311_p3, %p305_p0 }
   0xb   :  { %315 = shalt.err (!%p312_p4)
}
   0xc   :  { %s363_s15 = smov 128   ;;  %s364_s16 = smov 8  }
   0xd   :  { %22 = dma.hbm_to_vmem [thread:$0]  %s411_s0, 256, %s17_s13, [#allocation3], %s363_s15, %s363_s15, %s364_s16  }
   0xe   :  { %s365_s19 = smov [#allocation5]  }
   0xf   :  { %s28_s20 = sshll.u32 %s365_s19, 4  ;;  %s29_s20 = int_to_ptr.vmem [resolvable:$true] %s28_s20 }
  0x10   :  { %s324_s21 = scalar_lea.vmem %s29_s20, 1024  ;;  %p329_p6 = scmp.lt.s32.totalorder %s29_s20, %s29_s20 }
  0x11   :  { %p325_p5 = scmp.ne.s32.totalorder %s29_s20, %s324_s21  ;;  %p330_p7 = scmp.lt.s32.totalorder %s324_s21, %s324_s21 }
  0x13   :  { %p331_p8 = por %p330_p7, %p329_p6 }
  0x15   :  { %p332_p9 = pnand %p331_p8, %p325_p5 }
  0x17   :  { %335 = shalt.err (!%p332_p9)
}
  0x18   :  { %34 = dma.hbm_to_vmem [thread:$0]  %s412_s1, 1024, %s29_s20, [#allocation6], %s363_s15, %s363_s15, %s364_s16  }
  0x19   :  { %356 = dma.done.wait [#allocation3], 256  }
  0x1a   :  { %357 = vsyncadd [#allocation3], 4294967040 }
  0x1b   :  { %358 = dma.done.wait [#allocation6], 1024  }
  0x1c   :  { %359 = vsyncadd [#allocation6], 4294966272  ;;  %v48_v0 = vld [vmem:[#allocation5 + $0x18] sm:$0xff]  ;;  %v47_v2 = vld [vmem:[#allocation5 + $0x10] sm:$0xff]  ;;  %vm56_vm0 = vcmask 261120   ;;  %vm138_vm1 = vcmask 523264  }
  0x1d   :  { %v145_v1 = vld [vmem:[#allocation5 + $0x38] sm:$0xff]  ;;  %269 = vmatprep.subr.mxu0 %v48_v0  ;;  %v144_v3 = vld [vmem:[#allocation5 + $0x30] sm:$0xff]  ;;  %v46_v4 = vld [vmem:[#allocation5 + $0x8] sm:$0xff]  ;;  %s366_s26 = smov [#allocation7]  }
  0x1e   :  { %280 = vmatprep.subr.mxu1 %v145_v1  ;;  %270 = vmatpush3.msra.mxu0 %v48_v0  ;;  %v143_v5 = vld [vmem:[#allocation5 + $0x28] sm:$0xff]  ;;  %v45_v6 = vld [vmem:[#allocation5] sm:$0xff]  ;;  %v43_v8 = vld [vmem:[#allocation2] sm:$0xff]  ;;  %s237_s27 = sshll.u32 %s366_s26, 4  ;;  %s238_s27 = int_to_ptr.vmem [resolvable:$true] %s237_s27 }
  0x1f   :  { %281 = vmatpush3.msra.mxu1 %v145_v1  ;;  %271 = vmatprep.subr.mxu0 %v47_v2  ;;  %v142_v7 = vld [vmem:[#allocation5 + $0x20] sm:$0xff]  ;;  %v44_v9 = vld [vmem:[#allocation2 + $0x8] sm:$0xff]  ;;  %v250_v10 = vld [vmem:[%s413_s2] ss:$0 sm:$0xff]  ;;  %s336_s28 = scalar_lea.vmem %s238_s27, 512  ;;  %p341_p11 = scmp.lt.s32.totalorder %s238_s27, %s238_s27 }
  0x20   :  { %282 = vmatprep.subr.mxu1 %v144_v3  ;;  %272 = vmatpush3.msra.mxu0 %v47_v2  ;;  %v254_v11 = vld [vmem:[%s413_s2 + $0x1] ss:$0 sm:$0xff]  ;;  %p337_p10 = scmp.ne.s32.totalorder %s238_s27, %s336_s28  ;;  %p342_p12 = scmp.lt.s32.totalorder %s336_s28, %s336_s28 }
  0x21   :  { %283 = vmatpush3.msra.mxu1 %v144_v3  ;;  %273 = vmatprep.subr.mxu0 %v46_v4 }
  0x22   :  { %284 = vmatprep.subr.mxu1 %v143_v5  ;;  %274 = vmatpush3.msra.mxu0 %v46_v4  ;;  %p343_p13 = por %p342_p12, %p341_p11 }
  0x23   :  { %285 = vmatpush3.msra.mxu1 %v143_v5  ;;  %275 = vmatprep.subr.mxu0 %v45_v6 }
  0x24   :  { %286 = vmatprep.subr.mxu1 %v142_v7  ;;  %276 = vmatpush3.msra.mxu0 %v45_v6  ;;  %p344_p0 = pnand %p343_p13, %p337_p10 }
  0x25   :  { %277 = vmatprep.mubr.msk.f32.mxu0 %vm56_vm0, %v43_v8  ;;  %287 = vmatpush3.msra.mxu1 %v142_v7 }
  0x26   :  { %288 = vmatprep.mubr.msk.f32.mxu1 %vm56_vm0, %v43_v8  ;;  %278 = vmatmul.mubr.msk.f32.vlgmr.msra.gmra.mxu0 %vm56_vm0, %v44_v9 }
  0x27   :  { %289 = vmatmul.mubr.msk.f32.vlgmr.msra.gmra.mxu1 %vm56_vm0, %v44_v9 }
  0xe6   :  { %v279_v12 = vpop.f32.mrf.mxu0 }
  0xe7   :  { %v290_v13 = vpop.f32.mrf.mxu1  ;;  %v135_v14 = vadd.f32 %v279_v12, %v250_v10 }
  0xe8   :  { %v226_v15 = vadd.f32 %v290_v13, %v254_v11  ;;  %v129_v16 = vpop.f32.mrf.mxu0 }
  0xe9   :  { %v220_v17 = vpop.f32.mrf.mxu1  ;;  %140 = vst.msk [vmem:[#allocation7 + $0x8] sm:$0xff] %vm138_vm1, %v135_v14  ;;  %v130_v18 = vadd.f32 %v250_v10, %v129_v16 }
  0xea   :  { %231 = vst.msk [vmem:[#allocation7 + $0x18] sm:$0xff] %vm138_vm1, %v226_v15  ;;  %v221_v19 = vadd.f32 %v254_v11, %v220_v17 }
  0xeb   :  { %139 = vst.msk [vmem:[#allocation7] sm:$0xff] %vm138_vm1, %v130_v18 }
  0xec   :  { %230 = vst.msk [vmem:[#allocation7 + $0x10] sm:$0xff] %vm138_vm1, %v221_v19 }
  0xed   :  { %347 = shalt.err (!%p344_p0)
}
  0xee   :  { %243 = dma.vmem_to_hbm [thread:$0]  %s238_s27, 512, %s414_s3, [#allocation4], %s363_s15, %s363_s15, %s364_s16  }
  0xef   :  { %360 = dma.done.wait [#allocation4], 512  }
  0xf0   :  { %361 = vsyncadd [#allocation4], 4294966784 }
  0xf1   :  { %247 = vsyncpa [#allocation3], 1 }
  0xf2   :  { %248 = vsyncpa [#allocation6], 1 }
  0xf3   :  { %249 = vsyncpa [#allocation4], 1 }

</bundles_post_ra>
